<compile_context>
chip_gen: v7x
topology: tpu7x:2x2x1
jax: 0.10.0
libtpu: 0.0.40
codegen_flags: <defaults>
</compile_context>

<pallas_src>
import jax
import jax.numpy as jnp
from jax import lax
from jax.experimental import pallas as pl
from jax.experimental.pallas import tpu as pltpu


# ---------------------------------------------------------------------------
# Kernels
# ---------------------------------------------------------------------------

def _linear_kernel_small(x_ref, w_ref, b_ref, o_ref):
    """Single-block path.  x:(B,D)  w:(C,D)  b:(1,C)  o:(B,C)."""
    acc = lax.dot_general(
        x_ref[...], w_ref[...],
        dimension_numbers=(((1,), (1,)), ((), ())),   # contract D with D
        preferred_element_type=jnp.float32)           # (B, C) f32 accumulate
    o_ref[...] = (acc + b_ref[...]).astype(o_ref.dtype)


def _linear_kernel_tiled(x_ref, w_ref, b_ref, o_ref):
    """Batched-grid path, lane-dense output.

    x:(tm,D)  w:(C,D)  b:(C,1)  o:(C,tm)   —  o = w @ x^T + b
    The large tm dim sits on lanes so stores are unmasked vst.
    """
    acc = lax.dot_general(
        w_ref[...], x_ref[...],
        dimension_numbers=(((1,), (1,)), ((), ())),   # contract D with D
        preferred_element_type=jnp.float32)           # (C, tm) f32 accumulate
    o_ref[...] = (acc + b_ref[...]).astype(o_ref.dtype)


# ---------------------------------------------------------------------------
# Wrapper
# ---------------------------------------------------------------------------

def latent_classifier_forward(x, weight, bias):
    """x: (B, D), weight: (C, D) (PyTorch layout), bias: (C,).

    Returns jnp.squeeze(x @ weight.T + bias), matching
    LatentClassifier.forward semantics.
    """
    B, D = x.shape
    C, D2 = weight.shape
    assert D == D2

    if B < 128:
        # --- small-batch path: one MXU pass, no grid, no pipelining machinery.
        b2 = bias.reshape(1, C)
        out = pl.pallas_call(
            _linear_kernel_small,
            out_shape=jax.ShapeDtypeStruct((B, C), x.dtype),
            in_specs=[
                pl.BlockSpec(memory_space=pltpu.MemorySpace.VMEM),
                pl.BlockSpec(memory_space=pltpu.MemorySpace.VMEM),
                pl.BlockSpec(memory_space=pltpu.MemorySpace.VMEM),
            ],
            out_specs=pl.BlockSpec(memory_space=pltpu.MemorySpace.VMEM),
        )(x, weight, b2)
        return jnp.squeeze(out)

    # --- large-batch path: grid over batch, weight/bias VMEM-resident,
    #     lane-dense (C, tm) output tiles.
    # tm sized well under the v7x 64 MiB VMEM budget for any sane D/C; bump
    # toward 512-1024 for very large B (sweep per chip).
    tm = 512 if B >= 512 else 128
    b2 = bias.reshape(C, 1)

    out_t = pl.pallas_call(
        _linear_kernel_tiled,
        out_shape=jax.ShapeDtypeStruct((C, B), x.dtype),
        grid_spec=pl.GridSpec(
            grid=(pl.cdiv(B, tm),),
            in_specs=[
                pl.BlockSpec((tm, D), lambda i: (i, 0)),   # streamed batch tile
                pl.BlockSpec((C, D), lambda i: (0, 0)),    # weight stays hot in VMEM
                pl.BlockSpec((C, 1), lambda i: (0, 0)),    # bias stays hot in VMEM
            ],
            out_specs=pl.BlockSpec((C, tm), lambda i: (0, i)),
        ),
        compiler_params=pltpu.CompilerParams(
            # batch tiles are independent -> megacore / 2x v7x TensorCores
            dimension_semantics=("parallel",)),
    )(x, weight, b2)

    # Layout plumbing only: present (B, C) to the caller, then .squeeze().
    return jnp.squeeze(out_t.T)


# ---------------------------------------------------------------------------
# Self-test
# ---------------------------------------------------------------------------

if __name__ == "__main__":
    key = jax.random.PRNGKey(0)
    kx, kw, kb, kx2 = jax.random.split(key, 4)

    # Small shapes consistent with the module: batch=2, input_dim=32, classes=8.
    B, D, C = 2, 32, 8
    x = jax.random.normal(kx, (B, D), dtype=jnp.float32)
    bound = 1.0 / (D ** 0.5)
    weight = jax.random.uniform(kw, (C, D), minval=-bound, maxval=bound,
                                dtype=jnp.float32)
    bias = jax.random.uniform(kb, (C,), minval=-bound, maxval=bound,
                              dtype=jnp.float32)

    y = jax.block_until_ready(latent_classifier_forward(x, weight, bias))
    y_ref = jnp.squeeze(x @ weight.T + bias)
    assert y.shape == y_ref.shape
    assert jnp.allclose(y, y_ref, atol=1e-5, rtol=1e-5)

    # Also exercise the batched-grid (lane-dense) path with a larger batch.
    B2 = 256
    x2 = jax.random.normal(kx2, (B2, D), dtype=jnp.float32)
    y2 = jax.block_until_ready(latent_classifier_forward(x2, weight, bias))
    y2_ref = jnp.squeeze(x2 @ weight.T + bias)
    assert y2.shape == y2_ref.shape
    assert jnp.allclose(y2, y2_ref, atol=1e-5, rtol=1e-5)

    print("KERNEL_OK")
</pallas_src>

<mosaic_0001>
module attributes {stable_mosaic.version = 11 : i64} {
  func.func @_linear_kernel_small(%arg0: memref<2x32xf32, #tpu.memory_space<vmem>>, %arg1: memref<8x32xf32, #tpu.memory_space<vmem>>, %arg2: memref<1x8xf32, #tpu.memory_space<vmem>>, %arg3: memref<2x8xf32, #tpu.memory_space<vmem>>) attributes {dimension_semantics = [], scalar_prefetch = 0 : i64, scratch_operands = 0 : i64, tpu.core_type = #tpu.core_type<tc>} {
    %c0 = arith.constant 0 : index
    %c0_0 = arith.constant 0 : index
    %0 = vector.load %arg0[%c0, %c0_0] : memref<2x32xf32, #tpu.memory_space<vmem>>, vector<2x32xf32>
    %c0_1 = arith.constant 0 : index
    %c0_2 = arith.constant 0 : index
    %1 = vector.load %arg1[%c0_1, %c0_2] : memref<8x32xf32, #tpu.memory_space<vmem>>, vector<8x32xf32>
    %cst = arith.constant dense<0.000000e+00> : vector<2x8xf32>
    %2 = tpu.matmul %0, %1, %cst {dimension_numbers = #tpu.dot_dimension_numbers<[1], [1], [0], [0], [0, 0, 1, 0], [], []>} : vector<2x32xf32>, vector<8x32xf32>, vector<2x8xf32> -> vector<2x8xf32>
    %c0_3 = arith.constant 0 : index
    %c0_4 = arith.constant 0 : index
    %3 = vector.load %arg2[%c0_3, %c0_4] : memref<1x8xf32, #tpu.memory_space<vmem>>, vector<1x8xf32>
    %4 = vector.broadcast %3 : vector<1x8xf32> to vector<2x8xf32>
    %5 = arith.addf %2, %4 : vector<2x8xf32>
    %c0_5 = arith.constant 0 : index
    %c0_6 = arith.constant 0 : index
    %6 = vector.load %arg3[%c0_5, %c0_6] : memref<2x8xf32, #tpu.memory_space<vmem>>, vector<2x8xf32>
    tpu.vector_store %arg3[%c0_5, %c0_6], %5 {strides = array<i32>} : memref<2x8xf32, #tpu.memory_space<vmem>>, vector<2x8xf32>,
    return
  }
}

</mosaic_0001>

<bundles_post_ra>
// kernel: tpu_custom_call.1
= control target key start
LH: loop header
LB: loop body
LE: loop exit
PB: predicated region body
PF: predicated region fallthrough
CT: control target
= control target key end

     0   :  { %8 = vsyncpa [#allocation3], 0  ;;  %s294_s0 = inlined_call_operand.hbm [shape: f32[2,32], index: 0, kind: input, shape index: {}]   ;;  %s295_s1 = inlined_call_operand.hbm [shape: f32[8,32], index: 1, kind: input, shape index: {}]   ;;  %s296_s2 = inlined_call_operand.vmem [shape: f32[1,8], index: 2, kind: input, shape index: {}]   ;;  %s297_s3 = inlined_call_operand.hbm [shape: f32[2,8], index: 3, kind: output, shape index: {}]  }
   0x1   :  { %9 = vsyncpa [#allocation6], 0 }
   0x2   :  { %10 = vsyncpa [#allocation4], 0  ;;  %s230_s12 = smov [#allocation2]   ;;  %s231_s14 = smov [#allocation5]  }
   0x3   :  { %s17_s13 = sshll.u32 %s230_s12, 4  ;;  %s27_s15 = sshll.u32 %s231_s14, 4  ;;  %s18_s13 = int_to_ptr.vmem [resolvable:$true] %s17_s13  ;;  %s28_s15 = int_to_ptr.vmem [resolvable:$true] %s27_s15 }
   0x4   :  { %s158_s18 = scalar_lea.hbm %s294_s0, 32 }
   0x5   :  { %p159_p0 = scmp.ne.s32.totalorder %s294_s0, %s158_s18  ;;  %p162_p1 = scmp.lt.u32.totalorder %s158_s18, %s294_s0 }
   0x7   :  { %p164_p2 = pnand %p162_p1, %p159_p0 }
   0x9   :  { %167 = shalt.err (!%p164_p2)
}
   0xa   :  { %s168_s23 = scalar_lea.vmem %s18_s13, 32  ;;  %p173_p4 = scmp.lt.s32.totalorder %s18_s13, %s18_s13 }
   0xb   :  { %p169_p3 = scmp.ne.s32.totalorder %s18_s13, %s168_s23  ;;  %p174_p5 = scmp.lt.s32.totalorder %s168_s23, %s168_s23 }
   0xd   :  { %p175_p6 = por %p174_p5, %p173_p4 }
   0xf   :  { %p176_p7 = pnand %p175_p6, %p169_p3 }
  0x11   :  { %179 = shalt.err (!%p176_p7)
}
  0x12   :  { %20 = dma.hbm_to_vmem [thread:$0]  %s294_s0, 32, %s18_s13, [#allocation3]  }
  0x13   :  { %s180_s28 = scalar_lea.hbm %s295_s1, 128 }
  0x14   :  { %p181_p8 = scmp.ne.s32.totalorder %s295_s1, %s180_s28  ;;  %p184_p9 = scmp.lt.u32.totalorder %s180_s28, %s295_s1 }
  0x16   :  { %p186_p10 = pnand %p184_p9, %p181_p8 }
  0x18   :  { %189 = shalt.err (!%p186_p10)
}
  0x19   :  { %s190_s6 = scalar_lea.vmem %s28_s15, 128  ;;  %p195_p12 = scmp.lt.s32.totalorder %s28_s15, %s28_s15 }
  0x1a   :  { %p191_p11 = scmp.ne.s32.totalorder %s28_s15, %s190_s6  ;;  %p196_p13 = scmp.lt.s32.totalorder %s190_s6, %s190_s6 }
  0x1c   :  { %p197_p0 = por %p196_p13, %p195_p12 }
  0x1e   :  { %p198_p1 = pnand %p197_p0, %p191_p11 }
  0x20   :  { %201 = shalt.err (!%p198_p1)
}
  0x21   :  { %30 = dma.hbm_to_vmem [thread:$0]  %s295_s1, 128, %s28_s15, [#allocation6]  }
  0x22   :  { %224 = dma.done.wait [#allocation3], 32  }
  0x23   :  { %225 = vsyncadd [#allocation3], 4294967264 }
  0x24   :  { %226 = dma.done.wait [#allocation6], 128  }
  0x25   :  { %227 = vsyncadd [#allocation6], 4294967168  ;;  %v232_v0 = vmov 0.0   ;;  %vm233_vm0 = vmmov 0   ;;  %vm48_vm1 = vcmask 261120   ;;  %v40_v1 = vld [vmem:[#allocation5] sm:$0xff] }
  0x26   :  { %148 = vmatprep.subr.mxu0 %v232_v0  ;;  %150 = vmatprep.mubr.msk.f32.mxu0 %vm233_vm0, %v232_v0  ;;  %v39_v2 = vld [vmem:[#allocation2] sm:$0x3]  ;;  %s234_s10 = smov [#allocation7]   ;;  %vm125_vm2 = vcmask 58368  }
  0x27   :  { %149 = vmatpush3.xpose.msk.msra.mxu0 %vm48_vm1, %v40_v1  ;;  %v143_v3 = vld [vmem:[%s296_s2] ss:$0 sm:$0xff]  ;;  %s133_s11 = sshll.u32 %s234_s10, 4  ;;  %s134_s11 = int_to_ptr.vmem [resolvable:$true] %s133_s11 }
  0x28   :  { %s202_s1 = scalar_lea.vmem %s134_s11, 32  ;;  %p207_p3 = scmp.lt.s32.totalorder %s134_s11, %s134_s11 }
  0x29   :  { %p203_p2 = scmp.ne.s32.totalorder %s134_s11, %s202_s1  ;;  %p208_p4 = scmp.lt.s32.totalorder %s202_s1, %s202_s1 }
  0x2a   :  { %151 = vmatmul.mubr.msk.f32.vlgmr.msra.gmra.mrb[0].mxu0 %vm48_vm1, %v39_v2 }
  0x2b   :  { %p209_p5 = por %p208_p4, %p207_p3 }
  0x2d   :  { %p210_p6 = pnand %p209_p5, %p203_p2 }
  0xfd   :  { %v121_v4 = vpop.f32.mrb[0].mxu0 }
  0xfe   :  { %v122_v5 = vadd.f32 %v143_v3, %v121_v4  ;;  %v152_v6 = vpop.f32.mrb[1].mxu0 }
 0x100   :  { %126 = vst.msk [vmem:[#allocation7] sm:$0x3] %vm125_vm2, %v122_v5 }
 0x101   :  { %213 = shalt.err (!%p210_p6)
}
 0x102   :  { %s214_s14 = scalar_lea.hbm %s297_s3, 32 }
 0x103   :  { %p215_p7 = scmp.ne.s32.totalorder %s297_s3, %s214_s14  ;;  %p218_p8 = scmp.lt.u32.totalorder %s214_s14, %s297_s3 }
 0x105   :  { %p220_p9 = pnand %p218_p8, %p215_p7 }
 0x107   :  { %223 = shalt.err (!%p220_p9)
}
 0x108   :  { %136 = dma.vmem_to_hbm [thread:$0]  %s134_s11, 32, %s297_s3, [#allocation4]  }
 0x109   :  { %228 = dma.done.wait [#allocation4], 32  }
 0x10a   :  { %229 = vsyncadd [#allocation4], 4294967264 }
 0x10b   :  { %140 = vsyncpa [#allocation3], 1 }
 0x10c   :  { %141 = vsyncpa [#allocation6], 1 }
 0x10d   :  { %142 = vsyncpa [#allocation4], 1 }

</bundles_post_ra>
